<compile_context>
chip_gen: v7x
topology: tpu7x:2x2x1
jax: 0.10.0
libtpu: 0.0.40
codegen_flags: <defaults>
</compile_context>

<pallas_src>
import functools
import math

import jax
import jax.numpy as jnp
from jax.experimental import pallas as pl
from jax.experimental.pallas import tpu as pltpu


_LANES = 128
_SUBLANES = 8


def _flat_shift(v, s, col):
    """Exact cyclic shift of a row-major-flattened 2-D tile.

    Returns y with y_flat[f] = v_flat[(f + s) mod size].  Rolls run on the XLU
    slot; the single wrap fix-up select is the only VALU cost.
    """
    R, L = v.shape
    if s == 0:
        return v
    if s > 0:
        q, rem = divmod(s, L)
        a = pltpu.roll(v, shift=(L - rem) % L, axis=1) if rem else v
        b0 = pltpu.roll(a, shift=(R - q) % R, axis=0) if (q % R) else a
        if rem == 0:
            return b0
        b1 = pltpu.roll(a, shift=(R - q - 1) % R, axis=0)
        return jnp.where(col < L - rem, b0, b1)
    t = -s
    q, rem = divmod(t, L)
    a = pltpu.roll(v, shift=rem, axis=1) if rem else v
    b0 = pltpu.roll(a, shift=q % R, axis=0) if (q % R) else a
    if rem == 0:
        return b0
    b1 = pltpu.roll(a, shift=(q + 1) % R, axis=0)
    return jnp.where(col >= rem, b0, b1)


def _conv_affine_kernel(sc_ref, m_ref, x_ref, o_ref, *, W):
    """3x3 'same' conv with folded Linear(1,1), on a lane-dense flat tile.

    sc_ref : (16,) f32 SMEM   -- sc_ref[0] = conv_b*lin_w + lin_b
    m_ref  : (9, R, 128) f32  -- per-tap multiplier planes (weight * border mask),
                                 constant index_map -> resident across grid steps
    x_ref  : (R, 128) f32     -- row-major flattening of whole images
    o_ref  : (R, 128) f32
    """
    R, L = x_ref.shape
    x = x_ref[...]

    # Only used by the wrap fix-up selects of the +-W row shifts.
    col = jax.lax.broadcasted_iota(jnp.int32, (R, L), 1)

    # Exact cyclic flat shifts by +-W: value at (h-1, w) / (h+1, w).
    up = _flat_shift(x, -W, col)
    dn = _flat_shift(x, +W, col)

    lane_cheap = (W <= L) and (L % W == 0)

    def colshift(v, dj):
        if dj == 0:
            return v
        if lane_cheap:
            # Pure lane roll: the wrapped lanes always sit on image-column
            # borders, which the multiplier planes zero out.
            return pltpu.roll(v, shift=(L - dj) % L, axis=1)
        return _flat_shift(v, dj, col)

    rows = (up, x, dn)
    # Center tap + fused bias.
    acc = m_ref[4] * x + sc_ref[0]
    k = 0
    for di in (0, 1, 2):          # di index: 0 -> h-1, 1 -> h, 2 -> h+1
        for dj in (-1, 0, 1):
            if not (di == 1 and dj == 0):
                acc = acc + m_ref[k] * colshift(rows[di], dj)
            k += 1
    o_ref[...] = acc.astype(o_ref.dtype)


def model_forward(x, conv_w, conv_b, lin_w, lin_b):
    """x: [N, 1, H, W] float32 (NCHW). Returns flat vector of length N*H*W."""
    N, C, H, W = x.shape
    assert C == 1
    HW = H * W
    total = N * HW

    # ---- fold Linear(1,1) into the 9 taps; fuse the biases into one scalar.
    lw = lin_w.reshape(()).astype(jnp.float32)
    w9 = conv_w.reshape(9).astype(jnp.float32) * lw
    bias = (conv_b.reshape(()).astype(jnp.float32) * lw
            + lin_b.reshape(()).astype(jnp.float32))
    sc = jnp.zeros((16,), jnp.float32).at[0].set(bias)

    # ---- whole-image-aligned, lane-dense blocking (rows % 8 == 0, 128 lanes).
    imgs_min = (_SUBLANES * _LANES) // math.gcd(HW, _SUBLANES * _LANES)
    budget_elems = 1 << 16                           # 256 KiB f32 per input block
    budget_factor = max(1, budget_elems // (imgs_min * HW))
    needed_factor = -(-N // imgs_min)                # groups needed to cover N
    factor = min(budget_factor, max(1, needed_factor // 8), needed_factor)
    imgs_per_blk = imgs_min * factor
    n_blocks = -(-N // imgs_per_blk)
    N_pad = n_blocks * imgs_per_blk

    x_flat = x.astype(jnp.float32).reshape(total)
    if N_pad != N:
        # Pad only whole dummy images along N; trimmed from the flat output.
        x_flat = jnp.concatenate(
            [x_flat, jnp.zeros(((N_pad - N) * HW,), jnp.float32)])

    rows_per_blk = (imgs_per_blk * HW) // _LANES
    rows_total = n_blocks * rows_per_blk
    x2d = x_flat.reshape(rows_total, _LANES)

    # ---- per-tap multiplier planes: conv weight (already * lin_w), zeroed at
    # image borders.  Identical for every block; DMA'd into VMEM once per core.
    flat = jnp.arange(imgs_per_blk * HW, dtype=jnp.int32)
    w_idx = flat % W
    h_idx = (flat // W) % H
    ones = jnp.ones_like(flat, dtype=bool)
    h_ok = {-1: h_idx > 0, 0: ones, 1: h_idx < H - 1}
    w_ok = {-1: w_idx > 0, 0: ones, 1: w_idx < W - 1}
    planes = []
    k = 0
    for di in (-1, 0, 1):
        for dj in (-1, 0, 1):
            valid = jnp.logical_and(h_ok[di], w_ok[dj])
            planes.append(w9[k] * valid.astype(jnp.float32))
            k += 1
    mult = jnp.stack(planes).reshape(9, rows_per_blk, _LANES)

    out2d = pl.pallas_call(
        functools.partial(_conv_affine_kernel, W=W),
        out_shape=jax.ShapeDtypeStruct((rows_total, _LANES), jnp.float32),
        grid_spec=pltpu.PrefetchScalarGridSpec(
            num_scalar_prefetch=0,
            grid=(n_blocks,),
            in_specs=[
                pl.BlockSpec((16,), lambda i: (0,),
                             memory_space=pltpu.MemorySpace.SMEM),
                pl.BlockSpec((9, rows_per_blk, _LANES), lambda i: (0, 0, 0)),
                pl.BlockSpec((rows_per_blk, _LANES), lambda i: (i, 0)),
            ],
            out_specs=pl.BlockSpec((rows_per_blk, _LANES), lambda i: (i, 0)),
        ),
        compiler_params=pltpu.CompilerParams(
            dimension_semantics=("parallel",),
            vmem_limit_bytes=40 * 1024 * 1024),
    )(sc, mult, x2d)

    return out2d.reshape(-1)[:total]   # view(-1)


def _reference(x, conv_w, conv_b, lin_w, lin_b):
    """Independent pure-JAX reference (lax conv) for verification."""
    y = jax.lax.conv_general_dilated(
        x, conv_w, window_strides=(1, 1), padding=((1, 1), (1, 1)),
        dimension_numbers=("NCHW", "OIHW", "NCHW"))
    y = y + conv_b.reshape(1, 1, 1, 1)
    y = y * lin_w.reshape(()) + lin_b.reshape(())
    return y.reshape(-1)


if __name__ == "__main__":
    key = jax.random.PRNGKey(0)
    k_x, k_cw, k_cb, k_lw, k_lb = jax.random.split(key, 5)

    N, C, H, W = 2, 1, 16, 16
    x = jax.random.normal(k_x, (N, C, H, W), dtype=jnp.float32)

    # Deterministic parameter init (shapes match nn.Conv2d(1,1,3) / nn.Linear(1,1)).
    conv_w = jax.random.normal(k_cw, (1, 1, 3, 3), dtype=jnp.float32) * 0.2
    conv_b = jax.random.normal(k_cb, (1,), dtype=jnp.float32) * 0.1
    lin_w = jax.random.normal(k_lw, (1, 1), dtype=jnp.float32)
    lin_b = jax.random.normal(k_lb, (1,), dtype=jnp.float32)

    out = model_forward(x, conv_w, conv_b, lin_w, lin_b)
    out = jax.block_until_ready(out)

    ref = _reference(x, conv_w, conv_b, lin_w, lin_b)
    assert out.shape == (N * H * W,)
    assert jnp.allclose(out, ref, atol=1e-5, rtol=1e-5)

    print("KERNEL_OK")
</pallas_src>

<mosaic_0001>
module attributes {stable_mosaic.version = 11 : i64} {
  func.func @_conv_affine_kernel(%arg0: i32, %arg1: memref<16xf32, #tpu.memory_space<smem>>, %arg2: memref<9x8x128xf32, #tpu.memory_space<vmem>>, %arg3: memref<8x128xf32, #tpu.memory_space<vmem>>, %arg4: memref<8x128xf32, #tpu.memory_space<vmem>>) attributes {dimension_semantics = [#tpu.dimension_semantics<parallel>], iteration_bounds = array<i64: 1>, scalar_prefetch = 0 : i64, scratch_operands = 0 : i64, tpu.core_type = #tpu.core_type<tc>, window_params = [{transform_indices = @transform_0, window_bounds = array<i64: 16>}, {pipeline_mode = #tpu.pipeline_mode<synchronous>, transform_indices = @transform_1, window_bounds = array<i64: 9, 8, 128>}, {transform_indices = @transform_2, window_bounds = array<i64: 8, 128>}, {transform_indices = @transform_3, window_bounds = array<i64: 8, 128>}]} {
    %c0 = arith.constant 0 : index
    %c0_0 = arith.constant 0 : index
    %0 = vector.load %arg3[%c0, %c0_0] : memref<8x128xf32, #tpu.memory_space<vmem>>, vector<8x128xf32>
    %1 = tpu.iota {dimensions = array<i32: 1>} : vector<8x128xi32>
    %c16_i32 = arith.constant 16 : i32
    %2 = tpu.dynamic_rotate %0 by %c16_i32 dim 1 : vector<8x128xf32>, i32 -> vector<8x128xf32>
    %c1_i32 = arith.constant 1 : i32
    %3 = tpu.dynamic_rotate %2 by %c1_i32 dim 0 : vector<8x128xf32>, i32 -> vector<8x128xf32>
    %c16_i32_1 = arith.constant 16 : i32
    %4 = vector.broadcast %c16_i32_1 : i32 to vector<8x128xi32>
    %5 = arith.cmpi sge, %1, %4 : vector<8x128xi32>
    %6 = arith.select %5, %2, %3 : vector<8x128xi1>, vector<8x128xf32>
    %c112_i32 = arith.constant 112 : i32
    %7 = tpu.dynamic_rotate %0 by %c112_i32 dim 1 : vector<8x128xf32>, i32 -> vector<8x128xf32>
    %c7_i32 = arith.constant 7 : i32
    %8 = tpu.dynamic_rotate %7 by %c7_i32 dim 0 : vector<8x128xf32>, i32 -> vector<8x128xf32>
    %c112_i32_2 = arith.constant 112 : i32
    %9 = vector.broadcast %c112_i32_2 : i32 to vector<8x128xi32>
    %10 = arith.cmpi slt, %1, %9 : vector<8x128xi32>
    %11 = arith.select %10, %7, %8 : vector<8x128xi1>, vector<8x128xf32>
    %c4 = arith.constant 4 : index
    %c0_3 = arith.constant 0 : index
    %c0_4 = arith.constant 0 : index
    %12 = vector.load %arg2[%c4, %c0_3, %c0_4] : memref<9x8x128xf32, #tpu.memory_space<vmem>>, vector<1x8x128xf32>
    %13 = vector.shape_cast %12 : vector<1x8x128xf32> to vector<8x128xf32>
    %14 = arith.mulf %13, %0 : vector<8x128xf32>
    %c0_5 = arith.constant 0 : index
    %15 = memref.load %arg1[%c0_5] : memref<16xf32, #tpu.memory_space<smem>>
    %16 = vector.broadcast %15 : f32 to vector<8x128xf32>
    %17 = arith.addf %14, %16 : vector<8x128xf32>
    %c0_6 = arith.constant 0 : index
    %c0_7 = arith.constant 0 : index
    %c0_8 = arith.constant 0 : index
    %18 = vector.load %arg2[%c0_6, %c0_7, %c0_8] : memref<9x8x128xf32, #tpu.memory_space<vmem>>, vector<1x8x128xf32>
    %19 = vector.shape_cast %18 : vector<1x8x128xf32> to vector<8x128xf32>
    %c1_i32_9 = arith.constant 1 : i32
    %20 = tpu.dynamic_rotate %6 by %c1_i32_9 dim 1 : vector<8x128xf32>, i32 -> vector<8x128xf32>
    %21 = arith.mulf %19, %20 : vector<8x128xf32>
    %22 = arith.addf %17, %21 : vector<8x128xf32>
    %c1 = arith.constant 1 : index
    %c0_10 = arith.constant 0 : index
    %c0_11 = arith.constant 0 : index
    %23 = vector.load %arg2[%c1, %c0_10, %c0_11] : memref<9x8x128xf32, #tpu.memory_space<vmem>>, vector<1x8x128xf32>
    %24 = vector.shape_cast %23 : vector<1x8x128xf32> to vector<8x128xf32>
    %25 = arith.mulf %24, %6 : vector<8x128xf32>
    %26 = arith.addf %22, %25 : vector<8x128xf32>
    %c2 = arith.constant 2 : index
    %c0_12 = arith.constant 0 : index
    %c0_13 = arith.constant 0 : index
    %27 = vector.load %arg2[%c2, %c0_12, %c0_13] : memref<9x8x128xf32, #tpu.memory_space<vmem>>, vector<1x8x128xf32>
    %28 = vector.shape_cast %27 : vector<1x8x128xf32> to vector<8x128xf32>
    %c127_i32 = arith.constant 127 : i32
    %29 = tpu.dynamic_rotate %6 by %c127_i32 dim 1 : vector<8x128xf32>, i32 -> vector<8x128xf32>
    %30 = arith.mulf %28, %29 : vector<8x128xf32>
    %31 = arith.addf %26, %30 : vector<8x128xf32>
    %c3 = arith.constant 3 : index
    %c0_14 = arith.constant 0 : index
    %c0_15 = arith.constant 0 : index
    %32 = vector.load %arg2[%c3, %c0_14, %c0_15] : memref<9x8x128xf32, #tpu.memory_space<vmem>>, vector<1x8x128xf32>
    %33 = vector.shape_cast %32 : vector<1x8x128xf32> to vector<8x128xf32>
    %c1_i32_16 = arith.constant 1 : i32
    %34 = tpu.dynamic_rotate %0 by %c1_i32_16 dim 1 : vector<8x128xf32>, i32 -> vector<8x128xf32>
    %35 = arith.mulf %33, %34 : vector<8x128xf32>
    %36 = arith.addf %31, %35 : vector<8x128xf32>
    %c5 = arith.constant 5 : index
    %c0_17 = arith.constant 0 : index
    %c0_18 = arith.constant 0 : index
    %37 = vector.load %arg2[%c5, %c0_17, %c0_18] : memref<9x8x128xf32, #tpu.memory_space<vmem>>, vector<1x8x128xf32>
    %38 = vector.shape_cast %37 : vector<1x8x128xf32> to vector<8x128xf32>
    %c127_i32_19 = arith.constant 127 : i32
    %39 = tpu.dynamic_rotate %0 by %c127_i32_19 dim 1 : vector<8x128xf32>, i32 -> vector<8x128xf32>
    %40 = arith.mulf %38, %39 : vector<8x128xf32>
    %41 = arith.addf %36, %40 : vector<8x128xf32>
    %c6 = arith.constant 6 : index
    %c0_20 = arith.constant 0 : index
    %c0_21 = arith.constant 0 : index
    %42 = vector.load %arg2[%c6, %c0_20, %c0_21] : memref<9x8x128xf32, #tpu.memory_space<vmem>>, vector<1x8x128xf32>
    %43 = vector.shape_cast %42 : vector<1x8x128xf32> to vector<8x128xf32>
    %c1_i32_22 = arith.constant 1 : i32
    %44 = tpu.dynamic_rotate %11 by %c1_i32_22 dim 1 : vector<8x128xf32>, i32 -> vector<8x128xf32>
    %45 = arith.mulf %43, %44 : vector<8x128xf32>
    %46 = arith.addf %41, %45 : vector<8x128xf32>
    %c7 = arith.constant 7 : index
    %c0_23 = arith.constant 0 : index
    %c0_24 = arith.constant 0 : index
    %47 = vector.load %arg2[%c7, %c0_23, %c0_24] : memref<9x8x128xf32, #tpu.memory_space<vmem>>, vector<1x8x128xf32>
    %48 = vector.shape_cast %47 : vector<1x8x128xf32> to vector<8x128xf32>
    %49 = arith.mulf %48, %11 : vector<8x128xf32>
    %50 = arith.addf %46, %49 : vector<8x128xf32>
    %c8 = arith.constant 8 : index
    %c0_25 = arith.constant 0 : index
    %c0_26 = arith.constant 0 : index
    %51 = vector.load %arg2[%c8, %c0_25, %c0_26] : memref<9x8x128xf32, #tpu.memory_space<vmem>>, vector<1x8x128xf32>
    %52 = vector.shape_cast %51 : vector<1x8x128xf32> to vector<8x128xf32>
    %c127_i32_27 = arith.constant 127 : i32
    %53 = tpu.dynamic_rotate %11 by %c127_i32_27 dim 1 : vector<8x128xf32>, i32 -> vector<8x128xf32>
    %54 = arith.mulf %52, %53 : vector<8x128xf32>
    %55 = arith.addf %50, %54 : vector<8x128xf32>
    %c0_28 = arith.constant 0 : index
    %c0_29 = arith.constant 0 : index
    %56 = vector.load %arg4[%c0_28, %c0_29] : memref<8x128xf32, #tpu.memory_space<vmem>>, vector<8x128xf32>
    tpu.vector_store %arg4[%c0_28, %c0_29], %55 {strides = array<i32>} : memref<8x128xf32, #tpu.memory_space<vmem>>, vector<8x128xf32>,
    return
  }
  func.func @transform_0(%arg0: i32) -> i32 {
    %c0_i32 = arith.constant 0 : i32
    %c0_i32_0 = arith.constant 0 : i32
    return %c0_i32 : i32
  }
  func.func @transform_1(%arg0: i32) -> (i32, i32, i32) {
    %c0_i32 = arith.constant 0 : i32
    %c0_i32_0 = arith.constant 0 : i32
    %c0_i32_1 = arith.constant 0 : i32
    %c0_i32_2 = arith.constant 0 : i32
    return %c0_i32, %c0_i32_0, %c0_i32_1 : i32, i32, i32
  }
  func.func @transform_2(%arg0: i32) -> (i32, i32) {
    %c0_i32 = arith.constant 0 : i32
    %c0_i32_0 = arith.constant 0 : i32
    return %arg0, %c0_i32 : i32, i32
  }
  func.func @transform_3(%arg0: i32) -> (i32, i32) {
    %c0_i32 = arith.constant 0 : i32
    %c0_i32_0 = arith.constant 0 : i32
    return %arg0, %c0_i32 : i32, i32
  }
}

</mosaic_0001>

<bundles_post_ra>
// kernel: tpu_custom_call.1
= control target key start
LH: loop header
LB: loop body
LE: loop exit
PB: predicated region body
PF: predicated region fallthrough
CT: control target
= control target key end

     0   :  { %8 = vsyncpa [#allocation5], 0  ;;  %s304_s0 = inlined_call_operand.hbm [shape: f32[16], index: 0, kind: input, shape index: {}]   ;;  %s305_s1 = inlined_call_operand.hbm [shape: f32[9,8,128], index: 1, kind: input, shape index: {}]   ;;  %s306_s2 = inlined_call_operand.hbm [shape: f32[8,128], index: 2, kind: input, shape index: {}]   ;;  %s307_s3 = inlined_call_operand.hbm [shape: f32[8,128], index: 3, kind: output, shape index: {}]  }
   0x1   :  { %9 = vsyncpa [#allocation3], 0 }
   0x2   :  { %10 = vsyncpa [#allocation8], 0 }
   0x3   :  { %11 = vsyncpa [#allocation4], 0  ;;  %s142_s14 = scalar_lea.hbm %s304_s0, 16 }
   0x4   :  { %p143_p0 = scmp.ne.s32.totalorder %s304_s0, %s142_s14  ;;  %p146_p1 = scmp.lt.u32.totalorder %s142_s14, %s304_s0 }
   0x6   :  { %p148_p2 = pnand %p146_p1, %p143_p0 }
   0x8   :  { %151 = shalt.err (!%p148_p2)
}
   0x9   :  { %s226_s19 = smov [#allocation2]   ;;  %s227_s22 = smov [#allocation6]  }
   0xa   :  { %19 = dma.hbm_to_smem %s304_s0, 16, %s226_s19, [#allocation5]  }
   0xb   :  { %s25_s23 = sshll.u32 %s227_s22, 4  ;;  %s152_s26 = scalar_lea.hbm %s305_s1, 1152  ;;  %s26_s23 = int_to_ptr.vmem [resolvable:$true] %s25_s23 }
   0xc   :  { %p153_p3 = scmp.ne.s32.totalorder %s305_s1, %s152_s26  ;;  %p156_p4 = scmp.lt.u32.totalorder %s152_s26, %s305_s1 }
   0xe   :  { %p158_p5 = pnand %p156_p4, %p153_p3 }
  0x10   :  { %161 = shalt.err (!%p158_p5)
}
  0x11   :  { %s162_s4 = scalar_lea.vmem %s26_s23, 1152  ;;  %p167_p7 = scmp.lt.s32.totalorder %s26_s23, %s26_s23 }
  0x12   :  { %p163_p6 = scmp.ne.s32.totalorder %s26_s23, %s162_s4  ;;  %p168_p8 = scmp.lt.s32.totalorder %s162_s4, %s162_s4 }
  0x14   :  { %p169_p9 = por %p168_p8, %p167_p7 }
  0x16   :  { %p170_p10 = pnand %p169_p9, %p163_p6 }
  0x18   :  { %173 = shalt.err (!%p170_p10)
}
  0x19   :  { %s228_s0 = smov 128   ;;  %s229_s5 = smov 8  }
  0x1a   :  { %31 = dma.hbm_to_vmem [thread:$0]  %s305_s1, 1152, %s26_s23, [#allocation3], %s228_s0, %s228_s0, %s229_s5  }
  0x1b   :  { %s230_s8 = smov [#allocation7]   ;;  %s174_s12 = scalar_lea.hbm %s306_s2, 128 }
  0x1c   :  { %s38_s9 = sshll.u32 %s230_s8, 4  ;;  %p175_p11 = scmp.ne.s32.totalorder %s306_s2, %s174_s12  ;;  %s39_s9 = int_to_ptr.vmem [resolvable:$true] %s38_s9 }
  0x1d   :  { %p178_p12 = scmp.lt.u32.totalorder %s174_s12, %s306_s2 }
  0x1f   :  { %p180_p13 = pnand %p178_p12, %p175_p11 }
  0x21   :  { %183 = shalt.err (!%p180_p13)
}
  0x22   :  { %s184_s17 = scalar_lea.vmem %s39_s9, 128  ;;  %p189_p1 = scmp.lt.s32.totalorder %s39_s9, %s39_s9 }
  0x23   :  { %p185_p0 = scmp.ne.s32.totalorder %s39_s9, %s184_s17  ;;  %p190_p2 = scmp.lt.s32.totalorder %s184_s17, %s184_s17 }
  0x25   :  { %p191_p3 = por %p190_p2, %p189_p1 }
  0x27   :  { %p192_p4 = pnand %p191_p3, %p185_p0 }
  0x29   :  { %195 = shalt.err (!%p192_p4)
}
  0x2a   :  { %41 = dma.hbm_to_vmem [thread:$0]  %s306_s2, 128, %s39_s9, [#allocation8]  }
  0x2b   :  { %218 = dma.done.wait [#allocation5], 16  }
  0x2c   :  { %219 = vsyncadd [#allocation5], 4294967280 }
  0x2d   :  { %220 = dma.done.wait [#allocation3], 1152  }
  0x2e   :  { %221 = vsyncadd [#allocation3], 4294966144 }
  0x2f   :  { %222 = dma.done.wait [#allocation8], 128  }
  0x30   :  { %223 = vsyncadd [#allocation8], 4294967168 }
  0x31   :  { %51 = sfence }
  0x32   :  { %v52_v0 = vld [vmem:[#allocation7] sm:$0xff]  ;;  %s231_s19 = smov 16   ;;  %s232_s20 = smov 112   ;;  %v53_v1 = vlaneseq  ;;  %v66_v9 = vld [vmem:[#allocation6 + $0x20] sm:$0xff]  ;;  %v81_v17 = vld [vmem:[#allocation6 + $0x10] sm:$0xff] }
  0x33   :  { %55 = vrot.lane.b32.xlu0 %v52_v0, %s231_s19  ;;  %s233_s21 = smov 1   ;;  %s234_s2 = smov 127   ;;  %v67_v10 = vmul.f32 %v66_v9, %v52_v0  ;;  %v71_v12 = vld [vmem:[#allocation6] sm:$0xff]  ;;  %v77_v14 = vld [vmem:[#allocation6 + $0x8] sm:$0xff]  ;;  %v87_v18 = vld [vmem:[#allocation6 + $0x18] sm:$0xff] }
  0x34   :  { %v54_v2 = vand.u32 127, %v53_v1  ;;  %s68_s22 = sld [smem:[#allocation2]]  ;;  %v93_v26 = vld [vmem:[#allocation6 + $0x28] sm:$0xff]  ;;  %v99_v29 = vld [vmem:[#allocation6 + $0x30] sm:$0xff]  ;;  %v105_v33 = vld [vmem:[#allocation6 + $0x38] sm:$0xff]  ;;  %s235_s23 = smov [#allocation9]  }
  0x35   :  { %v109_v36 = vld [vmem:[#allocation6 + $0x40] sm:$0xff]  ;;  %s121_s24 = sshll.u32 %s235_s23, 4  ;;  %s122_s24 = int_to_ptr.vmem [resolvable:$true] %s121_s24 }
  0x36   :  { %vm58_vm0 = vcmp.ge.s32.totalorder %v54_v2, 16  ;;  %vm63_vm1 = vcmp.lt.s32.totalorder %v54_v2, 112  ;;  %s196_s25 = scalar_lea.vmem %s122_s24, 128  ;;  %p201_p6 = scmp.lt.s32.totalorder %s122_s24, %s122_s24 }
  0x37   :  { %60 = vrot.lane.b32.xlu0 %v52_v0, %s232_s20  ;;  %p197_p5 = scmp.ne.s32.totalorder %s122_s24, %s196_s25  ;;  %p202_p7 = scmp.lt.s32.totalorder %s196_s25, %s196_s25 }
  0x39   :  { %p203_p8 = por %p202_p7, %p201_p6 }
  0x3a   :  { %v69_v11 = vstv %s68_s22 }
  0x3b   :  { %88 = vrot.lane.b32.xlu0 %v52_v0, %s233_s21  ;;  %v70_v13 = vadd.f32 %v69_v11, %v67_v10  ;;  %p204_p9 = pnand %p203_p8, %p197_p5 }
  0xa5   :  { %v56_v3 = vpop.permute.xlu0 %55 }
  0xa6   :  { %v57_v4 = vrot.slane %v56_v3, 7 }
  0xa8   :  { %v59_v5 = vsel %vm58_vm0, %v56_v3, %v57_v4 }
  0xa9   :  { %72 = vrot.lane.b32.xlu1 %v59_v5, %s233_s21  ;;  %v61_v6 = vpop.permute.xlu0 %60  ;;  %v78_v20 = vmul.f32 %v77_v14, %v59_v5 }
  0xaa   :  { %v62_v7 = vrot.slane %v61_v6, 1 }
  0xac   :  { %v64_v8 = vsel %vm63_vm1, %v61_v6, %v62_v7 }
  0xad   :  { %82 = vrot.lane.b32.xlu1 %v59_v5, %s234_s2  ;;  %100 = vrot.lane.b32.xlu0 %v64_v8, %s233_s21  ;;  %v89_v19 = vpop.permute.xlu0 %88  ;;  %v106_v38 = vmul.f32 %v105_v33, %v64_v8 }
  0xae   :  { %v90_v25 = vmul.f32 %v89_v19, %v87_v18 }
  0xb1   :  { %94 = vrot.lane.b32.xlu1 %v52_v0, %s234_s2 }
  0xb5   :  { %110 = vrot.lane.b32.xlu1 %v64_v8, %s234_s2 }
 0x11b   :  { %v73_v15 = vpop.permute.xlu1 %72 }
 0x11c   :  { %v74_v16 = vmul.f32 %v73_v15, %v71_v12 }
 0x11e   :  { %v75_v21 = vadd.f32 %v74_v16, %v70_v13 }
 0x11f   :  { %v83_v22 = vpop.permute.xlu1 %82  ;;  %v101_v30 = vpop.permute.xlu0 %100 }
 0x120   :  { %v79_v23 = vadd.f32 %v78_v20, %v75_v21  ;;  %v84_v24 = vmul.f32 %v83_v22, %v81_v17  ;;  %v102_v35 = vmul.f32 %v101_v30, %v99_v29 }
 0x122   :  { %v85_v27 = vadd.f32 %v84_v24, %v79_v23 }
 0x123   :  { %v95_v28 = vpop.permute.xlu1 %94 }
 0x124   :  { %v91_v31 = vadd.f32 %v90_v25, %v85_v27  ;;  %v96_v32 = vmul.f32 %v95_v28, %v93_v26 }
 0x126   :  { %v97_v34 = vadd.f32 %v96_v32, %v91_v31 }
 0x127   :  { %v111_v37 = vpop.permute.xlu1 %110 }
 0x128   :  { %v103_v39 = vadd.f32 %v102_v35, %v97_v34  ;;  %v112_v40 = vmul.f32 %v111_v37, %v109_v36 }
 0x12a   :  { %v107_v41 = vadd.f32 %v106_v38, %v103_v39 }
 0x12c   :  { %v113_v42 = vadd.f32 %v112_v40, %v107_v41 }
 0x12e   :  { %114 = vst [vmem:[#allocation9] sm:$0xff] %v113_v42 }
 0x12f   :  { %207 = shalt.err (!%p204_p9)
}
 0x130   :  { %s208_s28 = scalar_lea.hbm %s307_s3, 128 }
 0x131   :  { %p209_p10 = scmp.ne.s32.totalorder %s307_s3, %s208_s28  ;;  %p212_p11 = scmp.lt.u32.totalorder %s208_s28, %s307_s3 }
 0x133   :  { %p214_p12 = pnand %p212_p11, %p209_p10 }
 0x135   :  { %217 = shalt.err (!%p214_p12)
}
 0x136   :  { %124 = dma.vmem_to_hbm [thread:$0]  %s122_s24, 128, %s307_s3, [#allocation4]  }
 0x137   :  { %224 = dma.done.wait [#allocation4], 128  }
 0x138   :  { %225 = vsyncadd [#allocation4], 4294967168 }
 0x139   :  { %128 = vsyncpa [#allocation3], 1 }
 0x13a   :  { %129 = vsyncpa [#allocation8], 1 }
 0x13b   :  { %130 = vsyncpa [#allocation4], 1 }
 0x13c   :  { %131 = vsyncpa [#allocation5], 1 }

</bundles_post_ra>
